<compile_context>
chip_gen: v6e
topology: v6e:2x2x1
jax: 0.10.0
libtpu: 0.0.40
codegen_flags: <defaults>
</compile_context>

<pallas_src>
import jax
import jax.numpy as jnp
from jax.experimental import pallas as pl
from jax.experimental.pallas import tpu as pltpu


def _round_up(x, m):
    return ((x + m - 1) // m) * m


def _rgcn_kernel(h_ref, hprop_ref, w_ref, b_ref, o_ref, acc_ref):
    """One (node-tile, k-tile) grid step: accumulate self-loop matmul, then on
    the last k step fuse bias + propagated residual + ReLU into a single store."""
    k = pl.program_id(1)

    @pl.when(k == 0)
    def _init():
        acc_ref[...] = jnp.zeros_like(acc_ref)

    # Self-loop message: MXU matmul with f32 accumulation.
    acc_ref[...] += jnp.dot(h_ref[...], w_ref[...],
                            preferred_element_type=jnp.float32)

    @pl.when(k == pl.num_programs(1) - 1)
    def _finalize():
        node_repr = (hprop_ref[...].astype(jnp.float32)
                     + b_ref[...].astype(jnp.float32)      # [1, out_p] broadcasts
                     + acc_ref[...])
        o_ref[...] = jnp.maximum(node_repr, 0.0).astype(o_ref.dtype)


def rgcn_layer_forward(h, h_prop, loop_weight, bias, *,
                       tile_n=256, tile_k=512, compute_dtype=None):
    """Fused RGCNLayer forward.

    h:           [N, in_feat]   node features fed to the self-loop matmul
    h_prop:      [N, out_feat]  node features after propagate()
    loop_weight: [in_feat, out_feat]
    bias:        [out_feat]
    compute_dtype: optional dtype (e.g. jnp.bfloat16) for the streamed matmul
                   operands (h, loop_weight). Accumulation / epilogue stay f32.
    returns:     [N, out_feat]
    """
    N, in_feat = h.shape
    out_feat = loop_weight.shape[1]
    assert h_prop.shape == (N, out_feat)
    assert bias.shape == (out_feat,)
    out_dtype = h.dtype

    if compute_dtype is not None:
        h = h.astype(compute_dtype)
        loop_weight = loop_weight.astype(compute_dtype)

    # ---- lane-dense feature padding (multiples of 128) --------------------
    out_p = _round_up(out_feat, 128)
    tile_k = min(tile_k, _round_up(in_feat, 128))      # multiple of 128
    in_p = _round_up(in_feat, tile_k)                   # divides evenly by tile_k

    # ---- node tile: large by default, shrunk + sublane(8)-aligned for tiny N
    tile_n = min(tile_n, _round_up(N, 8))
    n_p = _round_up(N, tile_n)

    h_pad = jnp.pad(h, ((0, n_p - N), (0, in_p - in_feat)))
    hp_pad = jnp.pad(h_prop, ((0, n_p - N), (0, out_p - out_feat)))
    w_pad = jnp.pad(loop_weight, ((0, in_p - in_feat), (0, out_p - out_feat)))
    b_pad = jnp.pad(bias.reshape(1, out_feat), ((0, 0), (0, out_p - out_feat)))

    grid = (n_p // tile_n, in_p // tile_k)

    # ---- VMEM budget (double-buffered inputs/outputs + f32 accumulator) ---
    in_bytes = jnp.dtype(h_pad.dtype).itemsize
    hp_bytes = jnp.dtype(hp_pad.dtype).itemsize
    o_bytes = jnp.dtype(out_dtype).itemsize
    tile_bytes = (2 * tile_n * tile_k * in_bytes      # h tile
                  + 2 * tile_k * out_p * in_bytes     # weight tile
                  + 2 * tile_n * out_p * hp_bytes     # h_prop tile
                  + 2 * tile_n * out_p * o_bytes      # output tile
                  + 2 * out_p * hp_bytes              # bias
                  + tile_n * out_p * 4)               # accumulator scratch
    vmem_limit = int(min(64 << 20, max(tile_bytes + (4 << 20), 32 << 20)))

    cost = pl.CostEstimate(
        flops=2 * N * in_feat * out_feat,
        transcendentals=0,
        bytes_accessed=int(N * in_feat * in_bytes
                           + in_feat * out_feat * in_bytes
                           + N * out_feat * hp_bytes
                           + out_feat * 4
                           + N * out_feat * o_bytes),
    )

    out_padded = pl.pallas_call(
        _rgcn_kernel,
        out_shape=jax.ShapeDtypeStruct((n_p, out_p), out_dtype),
        grid_spec=pltpu.PrefetchScalarGridSpec(
            num_scalar_prefetch=0,
            grid=grid,
            in_specs=[
                pl.BlockSpec((tile_n, tile_k), lambda i, k: (i, k)),
                pl.BlockSpec((tile_n, out_p), lambda i, k: (i, 0)),
                # NOTE: for very large feature widths the grid-invariant weight
                # and bias could be single-buffered (pipeline_mode=pl.Buffered(1))
                # to reclaim VMEM; kept at the default here for portability.
                pl.BlockSpec((tile_k, out_p), lambda i, k: (k, 0)),
                pl.BlockSpec((1, out_p), lambda i, k: (0, 0)),
            ],
            out_specs=pl.BlockSpec((tile_n, out_p), lambda i, k: (i, 0)),
            scratch_shapes=[pltpu.VMEM((tile_n, out_p), jnp.float32)],
        ),
        compiler_params=pltpu.CompilerParams(
            dimension_semantics=("parallel", "arbitrary"),
            vmem_limit_bytes=vmem_limit),
        cost_estimate=cost,
    )(h_pad, hp_pad, w_pad, b_pad)

    return out_padded[:N, :out_feat]


def _reference(h, h_prop, loop_weight, bias):
    loop_message = h @ loop_weight
    node_repr = h_prop + bias[None, :] + loop_message
    return jnp.maximum(node_repr, 0.0)


def _xavier_like(key, in_feat, out_feat):
    # Deterministic xavier_uniform_-style init, gain = calculate_gain('relu') = sqrt(2)
    k_w, k_b = jax.random.split(key)
    gain = jnp.sqrt(2.0)
    w_bound = gain * jnp.sqrt(6.0 / (in_feat + out_feat))
    w = jax.random.uniform(k_w, (in_feat, out_feat),
                           minval=-w_bound, maxval=w_bound, dtype=jnp.float32)
    b_bound = gain * jnp.sqrt(6.0 / (1 + out_feat))
    b = jax.random.uniform(k_b, (out_feat,),
                           minval=-b_bound, maxval=b_bound, dtype=jnp.float32)
    return w, b


if __name__ == "__main__":
    key = jax.random.PRNGKey(0)
    k1, k2, k3, k4 = jax.random.split(key, 4)

    # --- Case 1: small square layer, identity propagation, f32 ------------
    N, in_feat, out_feat = 16, 32, 32
    h = jax.random.normal(k1, (N, in_feat), dtype=jnp.float32)
    h_prop = h  # identity stand-in for abstract propagate()
    w, b = _xavier_like(k2, in_feat, out_feat)

    out = jax.block_until_ready(rgcn_layer_forward(h, h_prop, w, b))
    ref = _reference(h, h_prop, w, b)
    assert out.shape == (N, out_feat)
    assert jnp.allclose(out, ref, atol=1e-5, rtol=1e-5), "case1 mismatch"

    # --- Case 2: ragged N + non-128 features (exercises padding path) -----
    N2, in2, out2 = 200, 96, 64
    h2 = jax.random.normal(k3, (N2, in2), dtype=jnp.float32)
    hp2 = jax.random.normal(k4, (N2, out2), dtype=jnp.float32)
    w2, b2 = _xavier_like(k2, in2, out2)

    out2_k = jax.block_until_ready(rgcn_layer_forward(h2, hp2, w2, b2))
    ref2 = _reference(h2, hp2, w2, b2)
    assert out2_k.shape == (N2, out2)
    assert jnp.allclose(out2_k, ref2, atol=1e-5, rtol=1e-5), "case2 mismatch"

    # --- Case 3: bf16 streaming of matmul operands (f32 accumulate) -------
    out_bf16 = jax.block_until_ready(
        rgcn_layer_forward(h, h_prop, w, b, compute_dtype=jnp.bfloat16))
    assert jnp.allclose(out_bf16, ref, atol=1e-1, rtol=1e-1), "bf16 mismatch"

    print("KERNEL_OK")
</pallas_src>

<mosaic_0001>
module attributes {stable_mosaic.version = 11 : i64} {
  func.func @_rgcn_kernel(%arg0: i32, %arg1: i32, %arg2: memref<16x128xf32, #tpu.memory_space<vmem>>, %arg3: memref<16x128xf32, #tpu.memory_space<vmem>>, %arg4: memref<128x128xf32, #tpu.memory_space<vmem>>, %arg5: memref<1x128xf32, #tpu.memory_space<vmem>>, %arg6: memref<16x128xf32, #tpu.memory_space<vmem>>, %arg7: memref<16x128xf32, #tpu.memory_space<vmem>>) attributes {dimension_semantics = [#tpu.dimension_semantics<parallel>, #tpu.dimension_semantics<arbitrary>], iteration_bounds = array<i64: 1, 1>, scalar_prefetch = 0 : i64, scratch_operands = 1 : i64, tpu.core_type = #tpu.core_type<tc>, window_params = [{transform_indices = @transform_0, window_bounds = array<i64: 16, 128>}, {transform_indices = @transform_1, window_bounds = array<i64: 16, 128>}, {transform_indices = @transform_2, window_bounds = array<i64: 128, 128>}, {pipeline_mode = #tpu.pipeline_mode<synchronous>, transform_indices = @transform_3, window_bounds = array<i64: 1, 128>}, {transform_indices = @transform_4, window_bounds = array<i64: 16, 128>}]} {
    %c0_i32 = arith.constant 0 : i32
    %0 = arith.cmpi eq, %arg1, %c0_i32 : i32
    %1 = arith.extui %0 : i1 to i32
    %c0_i32_0 = arith.constant 0 : i32
    %2 = arith.cmpi ne, %1, %c0_i32_0 : i32
    scf.if %2 {
      %cst_10 = arith.constant 0.000000e+00 : f32
      %12 = vector.broadcast %cst_10 : f32 to vector<16x128xf32>
      %c0_11 = arith.constant 0 : index
      %c0_12 = arith.constant 0 : index
      %13 = vector.load %arg7[%c0_11, %c0_12] : memref<16x128xf32, #tpu.memory_space<vmem>>, vector<16x128xf32>
      tpu.vector_store %arg7[%c0_11, %c0_12], %12 {strides = array<i32>} : memref<16x128xf32, #tpu.memory_space<vmem>>, vector<16x128xf32>,
    } else {
    }
    %c0 = arith.constant 0 : index
    %c0_1 = arith.constant 0 : index
    %3 = vector.load %arg7[%c0, %c0_1] : memref<16x128xf32, #tpu.memory_space<vmem>>, vector<16x128xf32>
    %c0_2 = arith.constant 0 : index
    %c0_3 = arith.constant 0 : index
    %4 = vector.load %arg2[%c0_2, %c0_3] : memref<16x128xf32, #tpu.memory_space<vmem>>, vector<16x128xf32>
    %c0_4 = arith.constant 0 : index
    %c0_5 = arith.constant 0 : index
    %5 = vector.load %arg4[%c0_4, %c0_5] : memref<128x128xf32, #tpu.memory_space<vmem>>, vector<128x128xf32>
    %cst = arith.constant dense<0.000000e+00> : vector<16x128xf32>
    %6 = tpu.matmul %4, %5, %cst {dimension_numbers = #tpu.dot_dimension_numbers<[1], [0], [0], [1], [0, 0, 1, 1], [], []>} : vector<16x128xf32>, vector<128x128xf32>, vector<16x128xf32> -> vector<16x128xf32>
    %7 = arith.addf %3, %6 : vector<16x128xf32>
    %c0_6 = arith.constant 0 : index
    %c0_7 = arith.constant 0 : index
    %8 = vector.load %arg7[%c0_6, %c0_7] : memref<16x128xf32, #tpu.memory_space<vmem>>, vector<16x128xf32>
    tpu.vector_store %arg7[%c0_6, %c0_7], %7 {strides = array<i32>} : memref<16x128xf32, #tpu.memory_space<vmem>>, vector<16x128xf32>,
    %c0_i32_8 = arith.constant 0 : i32
    %9 = arith.cmpi eq, %arg1, %c0_i32_8 : i32
    %10 = arith.extui %9 : i1 to i32
    %c0_i32_9 = arith.constant 0 : i32
    %11 = arith.cmpi ne, %10, %c0_i32_9 : i32
    scf.if %11 {
      %c0_10 = arith.constant 0 : index
      %c0_11 = arith.constant 0 : index
      %12 = vector.load %arg3[%c0_10, %c0_11] : memref<16x128xf32, #tpu.memory_space<vmem>>, vector<16x128xf32>
      %c0_12 = arith.constant 0 : index
      %c0_13 = arith.constant 0 : index
      %13 = vector.load %arg5[%c0_12, %c0_13] : memref<1x128xf32, #tpu.memory_space<vmem>>, vector<1x128xf32>
      %14 = vector.broadcast %13 : vector<1x128xf32> to vector<16x128xf32>
      %15 = arith.addf %12, %14 : vector<16x128xf32>
      %c0_14 = arith.constant 0 : index
      %c0_15 = arith.constant 0 : index
      %16 = vector.load %arg7[%c0_14, %c0_15] : memref<16x128xf32, #tpu.memory_space<vmem>>, vector<16x128xf32>
      %17 = arith.addf %15, %16 : vector<16x128xf32>
      %cst_16 = arith.constant 0.000000e+00 : f32
      %18 = vector.broadcast %cst_16 : f32 to vector<16x128xf32>
      %19 = arith.maximumf %17, %18 : vector<16x128xf32>
      %c0_17 = arith.constant 0 : index
      %c0_18 = arith.constant 0 : index
      %20 = vector.load %arg6[%c0_17, %c0_18] : memref<16x128xf32, #tpu.memory_space<vmem>>, vector<16x128xf32>
      tpu.vector_store %arg6[%c0_17, %c0_18], %19 {strides = array<i32>} : memref<16x128xf32, #tpu.memory_space<vmem>>, vector<16x128xf32>,
    } else {
    }
    return
  }
  func.func @transform_0(%arg0: i32, %arg1: i32) -> (i32, i32) {
    %c0_i32 = arith.constant 0 : i32
    return %arg0, %arg1 : i32, i32
  }
  func.func @transform_1(%arg0: i32, %arg1: i32) -> (i32, i32) {
    %c0_i32 = arith.constant 0 : i32
    %c0_i32_0 = arith.constant 0 : i32
    return %arg0, %c0_i32 : i32, i32
  }
  func.func @transform_2(%arg0: i32, %arg1: i32) -> (i32, i32) {
    %c0_i32 = arith.constant 0 : i32
    %c0_i32_0 = arith.constant 0 : i32
    return %arg1, %c0_i32 : i32, i32
  }
  func.func @transform_3(%arg0: i32, %arg1: i32) -> (i32, i32) {
    %c0_i32 = arith.constant 0 : i32
    %c0_i32_0 = arith.constant 0 : i32
    %c0_i32_1 = arith.constant 0 : i32
    return %c0_i32, %c0_i32_0 : i32, i32
  }
  func.func @transform_4(%arg0: i32, %arg1: i32) -> (i32, i32) {
    %c0_i32 = arith.constant 0 : i32
    %c0_i32_0 = arith.constant 0 : i32
    return %arg0, %c0_i32 : i32, i32
  }
}

</mosaic_0001>

<bundles_post_ra>
// kernel: tpu_custom_call.1
= control target key start
LH: loop header
LB: loop body
LE: loop exit
PB: predicated region body
PF: predicated region fallthrough
CT: control target
= control target key end

     0   :  { %9 = vsyncpa [#allocation4], 0  ;;  %s408_s0 = inlined_call_operand.hbm [shape: f32[16,128], index: 0, kind: input, shape index: {}]   ;;  %s409_s1 = inlined_call_operand.hbm [shape: f32[16,128], index: 1, kind: input, shape index: {}]   ;;  %s410_s2 = inlined_call_operand.hbm [shape: f32[128,128], index: 2, kind: input, shape index: {}]   ;;  %s411_s3 = inlined_call_operand.vmem [shape: f32[1,128], index: 3, kind: input, shape index: {}]   ;;  %s412_s4 = inlined_call_operand.hbm [shape: f32[16,128], index: 4, kind: output, shape index: {}]  }
   0x1   :  { %10 = vsyncpa [#allocation7], 0 }
   0x2   :  { %11 = vsyncpa [#allocation5], 0  ;;  %s350_s15 = smov [#allocation6]   ;;  %s351_s17 = smov [#allocation3]  }
   0x3   :  { %s29_s16 = sshll.u32 %s350_s15, 4  ;;  %s17_s18 = sshll.u32 %s351_s17, 4  ;;  %s30_s16 = int_to_ptr.vmem [resolvable:$true] %s29_s16  ;;  %s18_s18 = int_to_ptr.vmem [resolvable:$true] %s17_s18 }
   0x4   :  { %s272_s19 = scalar_lea.vmem %s30_s16, 256  ;;  %p277_p1 = scmp.lt.s32.totalorder %s30_s16, %s30_s16 }
   0x5   :  { %p273_p0 = scmp.ne.s32.totalorder %s30_s16, %s272_s19  ;;  %p278_p2 = scmp.lt.s32.totalorder %s272_s19, %s272_s19 }
   0x7   :  { %p279_p3 = por %p278_p2, %p277_p1 }
   0x9   :  { %p280_p4 = pnand %p279_p3, %p273_p0 }
   0xb   :  { %283 = shalt.err (!%p280_p4)
}
   0xc   :  { %s352_s20 = smov 128   ;;  %s353_s21 = smov 8  }
   0xd   :  { %35 = dma.hbm_to_vmem [thread:$0]  %s409_s1, 256, %s30_s16, [#allocation7], %s352_s20, %s352_s20, %s353_s21  }
   0xe   :  { %s292_s24 = scalar_lea.vmem %s18_s18, 256  ;;  %p297_p6 = scmp.lt.s32.totalorder %s18_s18, %s18_s18 }
   0xf   :  { %p293_p5 = scmp.ne.s32.totalorder %s18_s18, %s292_s24  ;;  %p298_p7 = scmp.lt.s32.totalorder %s292_s24, %s292_s24 }
  0x11   :  { %p299_p8 = por %p298_p7, %p297_p6 }
  0x13   :  { %p300_p9 = pnand %p299_p8, %p293_p5 }
  0x15   :  { %303 = shalt.err (!%p300_p9)
}
  0x16   :  { %23 = dma.hbm_to_vmem [thread:$0]  %s408_s0, 256, %s18_s18, [#allocation4], %s352_s20, %s352_s20, %s353_s21  }
  0x17   :  { %s354_s27 = smov [#allocation8]  }
  0x18   :  { %s41_s28 = sshll.u32 %s354_s27, 4  ;;  %s42_s28 = int_to_ptr.vmem [resolvable:$true] %s41_s28 }
  0x19   :  { %s312_s29 = scalar_lea.vmem %s42_s28, 2048  ;;  %p317_p11 = scmp.lt.s32.totalorder %s42_s28, %s42_s28 }
  0x1a   :  { %p313_p10 = scmp.ne.s32.totalorder %s42_s28, %s312_s29  ;;  %p318_p12 = scmp.lt.s32.totalorder %s312_s29, %s312_s29 }
  0x1c   :  { %p319_p13 = por %p318_p12, %p317_p11 }
  0x1e   :  { %p320_p0 = pnand %p319_p13, %p313_p10 }
  0x20   :  { %323 = shalt.err (!%p320_p0)
}
  0x21   :  { %47 = dma.hbm_to_vmem [thread:$0]  %s410_s2, 2048, %s42_s28, [#allocation7], %s352_s20, %s352_s20, %s353_s21  }
  0x22   :  { %344 = dma.done.wait [#allocation4], 256  }
  0x23   :  { %345 = vsyncadd [#allocation4], 4294967040 }
  0x24   :  { %346 = dma.done.wait [#allocation7], 2304  }
  0x25   :  { %347 = vsyncadd [#allocation7], 4294964992  ;;  %v84_v0 = vld [vmem:[#allocation8 + $0x78] sm:$0xff]  ;;  %v83_v1 = vld [vmem:[#allocation8 + $0x70] sm:$0xff]  ;;  %s355_s5 = smov [#allocation9]  }
  0x26   :  { %223 = vmatprep.subr.mxu0 %v84_v0  ;;  %v82_v2 = vld [vmem:[#allocation8 + $0x68] sm:$0xff]  ;;  %v81_v3 = vld [vmem:[#allocation8 + $0x60] sm:$0xff]  ;;  %v80_v5 = vld [vmem:[#allocation8 + $0x58] sm:$0xff]  ;;  %s191_s6 = sshll.u32 %s355_s5, 4  ;;  %s192_s6 = int_to_ptr.vmem [resolvable:$true] %s191_s6 }
  0x27   :  { %224 = vmatpush3.msra.mxu0 %v84_v0  ;;  %v67_v4 = vld [vmem:[#allocation3] sm:$0xff]  ;;  %v79_v6 = vld [vmem:[#allocation8 + $0x50] sm:$0xff]  ;;  %v78_v7 = vld [vmem:[#allocation8 + $0x48] sm:$0xff]  ;;  %s324_s7 = scalar_lea.vmem %s192_s6, 256  ;;  %p329_p2 = scmp.lt.s32.totalorder %s192_s6, %s192_s6 }
  0x28   :  { %225 = vmatprep.subr.mxu0 %v83_v1  ;;  %255 = vmatprep.mubr.f32.mxu0 %v67_v4  ;;  %v77_v8 = vld [vmem:[#allocation8 + $0x40] sm:$0xff]  ;;  %v76_v9 = vld [vmem:[#allocation8 + $0x38] sm:$0xff]  ;;  %v75_v10 = vld [vmem:[#allocation8 + $0x30] sm:$0xff]  ;;  %p325_p1 = scmp.ne.s32.totalorder %s192_s6, %s324_s7  ;;  %p330_p3 = scmp.lt.s32.totalorder %s324_s7, %s324_s7 }
  0x29   :  { %226 = vmatpush3.msra.mxu0 %v83_v1  ;;  %v74_v11 = vld [vmem:[#allocation8 + $0x28] sm:$0xff]  ;;  %v73_v12 = vld [vmem:[#allocation8 + $0x20] sm:$0xff]  ;;  %v72_v13 = vld [vmem:[#allocation8 + $0x18] sm:$0xff] }
  0x2a   :  { %227 = vmatprep.subr.mxu0 %v82_v2  ;;  %v71_v14 = vld [vmem:[#allocation8 + $0x10] sm:$0xff]  ;;  %v70_v15 = vld [vmem:[#allocation8 + $0x8] sm:$0xff]  ;;  %v69_v16 = vld [vmem:[#allocation8] sm:$0xff]  ;;  %p331_p4 = por %p330_p3, %p329_p2 }
  0x2b   :  { %228 = vmatpush3.msra.mxu0 %v82_v2  ;;  %v68_v17 = vld [vmem:[#allocation3 + $0x8] sm:$0xff]  ;;  %v168_v18 = vld [vmem:[#allocation6 + $0x8] sm:$0xff]  ;;  %v204_v19 = vld [vmem:[%s411_s3] ss:$0 sm:$0xff] }
  0x2c   :  { %229 = vmatprep.subr.mxu0 %v81_v3  ;;  %v167_v20 = vld [vmem:[#allocation6] sm:$0xff]  ;;  %v177_v21 = vadd.f32 %v204_v19, %v168_v18  ;;  %p332_p5 = pnand %p331_p4, %p325_p1 }
  0x2d   :  { %230 = vmatpush3.msra.mxu0 %v81_v3  ;;  %v176_v22 = vadd.f32 %v204_v19, %v167_v20 }
  0x2e   :  { %231 = vmatprep.subr.mxu0 %v80_v5 }
  0x2f   :  { %232 = vmatpush3.msra.mxu0 %v80_v5 }
  0x30   :  { %233 = vmatprep.subr.mxu0 %v79_v6 }
  0x31   :  { %234 = vmatpush3.msra.mxu0 %v79_v6 }
  0x32   :  { %235 = vmatprep.subr.mxu0 %v78_v7 }
  0x33   :  { %236 = vmatpush3.msra.mxu0 %v78_v7 }
  0x34   :  { %237 = vmatprep.subr.mxu0 %v77_v8 }
  0x35   :  { %238 = vmatpush3.msra.mxu0 %v77_v8 }
  0x36   :  { %239 = vmatprep.subr.mxu0 %v76_v9 }
  0x37   :  { %240 = vmatpush3.msra.mxu0 %v76_v9 }
  0x38   :  { %241 = vmatprep.subr.mxu0 %v75_v10 }
  0x39   :  { %242 = vmatpush3.msra.mxu0 %v75_v10 }
  0x3a   :  { %243 = vmatprep.subr.mxu0 %v74_v11 }
  0x3b   :  { %244 = vmatpush3.msra.mxu0 %v74_v11 }
  0x3c   :  { %245 = vmatprep.subr.mxu0 %v73_v12 }
  0x3d   :  { %246 = vmatpush3.msra.mxu0 %v73_v12 }
  0x3e   :  { %247 = vmatprep.subr.mxu0 %v72_v13 }
  0x3f   :  { %248 = vmatpush3.msra.mxu0 %v72_v13 }
  0x40   :  { %249 = vmatprep.subr.mxu0 %v71_v14 }
  0x41   :  { %250 = vmatpush3.msra.mxu0 %v71_v14 }
  0x42   :  { %251 = vmatprep.subr.mxu0 %v70_v15 }
  0x43   :  { %252 = vmatpush3.msra.mxu0 %v70_v15 }
  0x44   :  { %253 = vmatprep.subr.mxu0 %v69_v16 }
  0x45   :  { %254 = vmatpush3.msra.mxu0 %v69_v16 }
  0x46   :  { %256 = vmatmul.mubr.f32.vlgmr.msra.gmra.mxu0 %v68_v17 }
 0x106   :  { %v257_v23 = vpop.f32.mrf.mxu0 }
 0x107   :  { %v181_v24 = vadd.f32 %v257_v23, %v177_v21 }
 0x108   :  { %v151_v25 = vpop.f32.mrf.mxu0 }
 0x109   :  { %v183_v26 = vmax.f32 %v181_v24, 0.0  ;;  %v180_v27 = vadd.f32 %v176_v22, %v151_v25 }
 0x10b   :  { %185 = vst [vmem:[#allocation9 + $0x8] sm:$0xff] %v183_v26  ;;  %v182_v28 = vmax.f32 %v180_v27, 0.0 }
 0x10d   :  { %184 = vst [vmem:[#allocation9] sm:$0xff] %v182_v28 }
 0x10e   :  { %335 = shalt.err (!%p332_p5)
}
 0x10f   :  { %197 = dma.vmem_to_hbm [thread:$0]  %s192_s6, 256, %s412_s4, [#allocation5], %s352_s20, %s352_s20, %s353_s21  }
 0x110   :  { %348 = dma.done.wait [#allocation5], 256  }
 0x111   :  { %349 = vsyncadd [#allocation5], 4294967040 }
 0x112   :  { %201 = vsyncpa [#allocation4], 1 }
 0x113   :  { %202 = vsyncpa [#allocation7], 1 }
 0x114   :  { %203 = vsyncpa [#allocation5], 1 }

</bundles_post_ra>
